<compile_context>
chip_gen: v7x
topology: tpu7x:2x2x1
jax: 0.10.0
libtpu: 0.0.40
codegen_flags: <defaults>
</compile_context>

<pallas_src>
import functools

import jax
import jax.numpy as jnp
from jax.experimental import pallas as pl
from jax.experimental.pallas import tpu as pltpu


# Names of the (1, H)-shaped parameters packed into one (12, H) f32 slab.
_VEC_NAMES = ('ln0_g', 'ln0_b', 'bq', 'bk', 'bv', 'bo',
              'ln1_g', 'ln1_b', 'b2', 'ln2_g', 'ln2_b', 'bp')


def _layernorm(x, g, b, eps=1e-12):
    mu = jnp.mean(x, axis=-1, keepdims=True)
    var = jnp.mean((x - mu) * (x - mu), axis=-1, keepdims=True)
    return (x - mu) * jax.lax.rsqrt(var + eps) * g + b


# ----------------------------- Pallas kernel ------------------------------ #
# One grid step == one batch element.  All activations are 2-D (S, H) so every
# projection is a single dense MXU matmul (no per-batch micro-matmuls).
def encoder_kernel(ids_ref, tt_ref, mask_ref,
                   wemb_ref, temb_ref, pemb_ref,
                   wmats_ref, w1_ref, b1_ref, w2_ref,
                   vecs_ref, wout_ref, bout_ref,
                   out_ref):
    S = ids_ref.shape[1]
    V, H = wemb_ref.shape
    T = temb_ref.shape[0]

    ids = ids_ref[0]          # (S, 1) int32
    tts = tt_ref[0]           # (S, 1) int32
    mask = mask_ref[0]        # (1, S) f32 in {0, 1}

    # ---- fused embedding gather (one-hot matmul; exact f32 selection) ----
    v_iota = jax.lax.broadcasted_iota(jnp.int32, (S, V), 1)
    oh_w = (ids == v_iota).astype(jnp.float32)                       # (S, V)
    x = jnp.dot(oh_w, wemb_ref[...], preferred_element_type=jnp.float32)
    temb = temb_ref[...]                                             # (T, H)
    if T == 2:   # common BERT case: cheap select instead of a K=2 matmul
        sel0 = (tts == 0).astype(jnp.float32)                        # (S, 1)
        x = x + sel0 * temb[0:1, :] + (1.0 - sel0) * temb[1:2, :]
    else:
        t_iota = jax.lax.broadcasted_iota(jnp.int32, (S, T), 1)
        oh_t = (tts == t_iota).astype(jnp.float32)
        x = x + jnp.dot(oh_t, temb, preferred_element_type=jnp.float32)
    x = x + pemb_ref[...]                                            # (S, H)

    # ---- unpack the consolidated (12, H) bias / LayerNorm slab ----
    vecs = vecs_ref[...]
    ln0_g, ln0_b = vecs[0:1], vecs[1:2]
    bq, bk, bv, bo = vecs[2:3], vecs[3:4], vecs[4:5], vecs[5:6]
    ln1_g, ln1_b = vecs[6:7], vecs[7:8]
    b2 = vecs[8:9]
    ln2_g, ln2_b = vecs[9:10], vecs[10:11]
    bp = vecs[11:12]

    x = _layernorm(x, ln0_g, ln0_b)

    # ---- self attention (single head): bf16 MXU matmuls, f32 accumulation,
    #      f32 elementwise math (v5e VPU has no bf16) ----
    xb = x.astype(jnp.bfloat16)
    q = jnp.dot(xb, wmats_ref[0], preferred_element_type=jnp.float32) + bq
    k = jnp.dot(xb, wmats_ref[1], preferred_element_type=jnp.float32) + bk
    v = jnp.dot(xb, wmats_ref[2], preferred_element_type=jnp.float32) + bv

    scores = jax.lax.dot_general(
        q.astype(jnp.bfloat16), k.astype(jnp.bfloat16),
        (((1,), (1,)), ((), ())),
        preferred_element_type=jnp.float32) * (float(H) ** -0.5)     # (S, S)
    scores = scores + (1.0 - mask) * (-1e9)   # additive padding mask

    m = jnp.max(scores, axis=-1, keepdims=True)
    p = jnp.exp(scores - m)
    p = p / jnp.sum(p, axis=-1, keepdims=True)   # exact softmax (no approx rcp)

    attn = jnp.dot(p.astype(jnp.bfloat16), v.astype(jnp.bfloat16),
                   preferred_element_type=jnp.float32)               # (S, H)
    attn = jnp.dot(attn.astype(jnp.bfloat16), wmats_ref[3],
                   preferred_element_type=jnp.float32) + bo

    h1 = _layernorm(x + attn, ln1_g, ln1_b)

    # ---- feed-forward ----
    f = jnp.dot(h1.astype(jnp.bfloat16), w1_ref[...],
                preferred_element_type=jnp.float32) + b1_ref[...]
    # TODO(synk): HF BERT default is the exact erf GELU; tanh approximation is
    # kept because it is guaranteed to lower on every TPU generation.
    f = jax.nn.gelu(f, approximate=True)
    f = jnp.dot(f.astype(jnp.bfloat16), w2_ref[...],
                preferred_element_type=jnp.float32) + b2

    h2 = _layernorm(h1 + f, ln2_g, ln2_b)

    # ---- pooler (CLS) + classifier, packed into one lane-dense 128-wide slab:
    #      slab = [ pooled | pooled @ wc + bc | 0 ]  (identity copy is f32-exact)
    cls = h2[0:1, :]                                                 # (1, H)
    pooled = jnp.tanh(
        jnp.dot(cls.astype(jnp.bfloat16), wmats_ref[4],
                preferred_element_type=jnp.float32) + bp)            # (1, H)
    slab = jnp.dot(pooled, wout_ref[...],
                   preferred_element_type=jnp.float32) + bout_ref[...]
    out_ref[...] = slab[None].astype(out_ref.dtype)                  # (1,1,OL)


# ------------------------------ JAX wrapper -------------------------------- #
@functools.partial(jax.jit, static_argnames=('num_labels',))
def _base_model_call(input_ids, token_type_ids, attention_mask,
                     embeddings, weights, num_labels=1):
    B, S = input_ids.shape
    wemb = embeddings['word_emb'].astype(jnp.float32)
    temb = embeddings['type_emb'].astype(jnp.float32)
    pemb_s = embeddings['pos_emb'][:S].astype(jnp.float32)           # (S, H)
    V, H = wemb.shape
    T = temb.shape[0]
    FF = weights['w1'].shape[1]
    OL = max(128, -(-(H + num_labels) // 128) * 128)   # lane-dense out width

    ids3 = input_ids.astype(jnp.int32).reshape(B, S, 1)
    tt3 = token_type_ids.astype(jnp.int32).reshape(B, S, 1)
    mask3 = attention_mask.astype(jnp.float32).reshape(B, 1, S)

    # Weight consolidation: five (H,H) matrices in one bf16 stack, twelve
    # (1,H) vectors in one f32 slab, classifier folded into a lane-dense
    # [I_H | wc | 0] head matrix so pooled+logits come out as one 128-wide slab.
    w_mats = jnp.stack([weights['wq'], weights['wk'], weights['wv'],
                        weights['wo'], weights['wp']]).astype(jnp.bfloat16)
    w1 = weights['w1'].astype(jnp.bfloat16)
    w2 = weights['w2'].astype(jnp.bfloat16)
    b1 = weights['b1'].astype(jnp.float32)
    vecs = jnp.concatenate([weights[n].reshape(1, H) for n in _VEC_NAMES],
                           axis=0).astype(jnp.float32)               # (12, H)

    w_out = jnp.zeros((H, OL), jnp.float32)
    w_out = w_out.at[:, :H].set(jnp.eye(H, dtype=jnp.float32))
    w_out = w_out.at[:, H:H + num_labels].set(weights['wc'].astype(jnp.float32))
    b_out = jnp.zeros((1, OL), jnp.float32)
    b_out = b_out.at[:, H:H + num_labels].set(weights['bc'].astype(jnp.float32))

    operands = (ids3, tt3, mask3, wemb, temb, pemb_s,
                w_mats, w1, b1, w2, vecs, w_out, b_out)

    # Advisory cost estimate for XLA's scheduler.
    flops = 2 * B * (S * V * H + S * T * H + 4 * S * H * H + 2 * S * S * H
                     + 2 * S * H * FF + H * H + H * OL)
    transcendentals = B * (S * S + S * FF + 3 * S + H)
    bytes_accessed = (sum(int(a.size) * a.dtype.itemsize for a in operands)
                      + B * OL * 4)

    slab = pl.pallas_call(
        encoder_kernel,
        out_shape=jax.ShapeDtypeStruct((B, 1, OL), jnp.float32),
        grid=(B,),
        in_specs=[
            pl.BlockSpec((1, S, 1), lambda b: (b, 0, 0)),     # input_ids
            pl.BlockSpec((1, S, 1), lambda b: (b, 0, 0)),     # token_type_ids
            pl.BlockSpec((1, 1, S), lambda b: (b, 0, 0)),     # attention_mask
            pl.BlockSpec((V, H), lambda b: (0, 0)),           # word_emb
            pl.BlockSpec((T, H), lambda b: (0, 0)),           # type_emb
            pl.BlockSpec((S, H), lambda b: (0, 0)),           # pos_emb[:S]
            pl.BlockSpec((5, H, H), lambda b: (0, 0, 0)),     # wq/wk/wv/wo/wp
            pl.BlockSpec((H, FF), lambda b: (0, 0)),          # w1 (bf16)
            pl.BlockSpec((1, FF), lambda b: (0, 0)),          # b1
            pl.BlockSpec((FF, H), lambda b: (0, 0)),          # w2 (bf16)
            pl.BlockSpec((12, H), lambda b: (0, 0)),          # packed vectors
            pl.BlockSpec((H, OL), lambda b: (0, 0)),          # [I | wc | 0]
            pl.BlockSpec((1, OL), lambda b: (0, 0)),          # [0 | bc | 0]
        ],
        out_specs=pl.BlockSpec((1, 1, OL), lambda b: (b, 0, 0)),
        compiler_params=pltpu.CompilerParams(
            dimension_semantics=("parallel",)),
        cost_estimate=pl.CostEstimate(flops=flops,
                                      transcendentals=transcendentals,
                                      bytes_accessed=bytes_accessed),
    )(*operands)

    slab = slab[:, 0, :]                          # (B, OL) lane-dense slab
    logits = slab[:, H:H + num_labels]            # (B, num_labels)
    pooled = slab[:, :H]                          # (B, H)
    return logits, pooled


# ------------------------- Learner (JAX wrapper) --------------------------- #
class Learner:
    """JAX/Pallas mirror of inc_rel.meta.learner.Learner.forward().

    forward(input_ids, token_type_ids, attention_mask, params=None):
      * params falsy  -> reset_params(): use the initial (meta) parameters.
      * params dict   -> set_params(params): override the fast weights.
    Returns (logits, pooled) like a HF sequence-classification output tuple.
    """

    def __init__(self, key, vocab_size=100, type_vocab_size=2, max_pos=16,
                 hidden=32, intermediate=64, num_labels=1,
                 learning_rate=1e-3, exclude_classifier=False):
        self.learning_rate = learning_rate
        self.exclude_classifier = exclude_classifier
        self.num_labels = num_labels
        self.hidden = hidden

        keys = jax.random.split(key, 16)
        std = 0.02

        def rnd(k, shape):
            return jax.random.normal(k, shape, jnp.float32) * std

        H, I = hidden, intermediate
        self.embeddings = {
            'word_emb': rnd(keys[0], (vocab_size, H)),
            'type_emb': rnd(keys[1], (type_vocab_size, H)),
            'pos_emb':  rnd(keys[2], (max_pos, H)),
        }
        self.init_params = {
            'ln0_g': jnp.ones((1, H), jnp.float32),
            'ln0_b': jnp.zeros((1, H), jnp.float32),
            'wq': rnd(keys[3], (H, H)), 'bq': jnp.zeros((1, H), jnp.float32),
            'wk': rnd(keys[4], (H, H)), 'bk': jnp.zeros((1, H), jnp.float32),
            'wv': rnd(keys[5], (H, H)), 'bv': jnp.zeros((1, H), jnp.float32),
            'wo': rnd(keys[6], (H, H)), 'bo': jnp.zeros((1, H), jnp.float32),
            'ln1_g': jnp.ones((1, H), jnp.float32),
            'ln1_b': jnp.zeros((1, H), jnp.float32),
            'w1': rnd(keys[7], (H, I)), 'b1': jnp.zeros((1, I), jnp.float32),
            'w2': rnd(keys[8], (I, H)), 'b2': jnp.zeros((1, H), jnp.float32),
            'ln2_g': jnp.ones((1, H), jnp.float32),
            'ln2_b': jnp.zeros((1, H), jnp.float32),
            'wp': rnd(keys[9], (H, H)), 'bp': jnp.zeros((1, H), jnp.float32),
            'wc': rnd(keys[10], (H, num_labels)),
            'bc': jnp.zeros((1, num_labels), jnp.float32),
        }

    # --- meta-parameter plumbing (mirrors get/set/reset_params) --- #
    def get_params(self):
        return dict(self.init_params)

    def reset_params(self):
        return dict(self.init_params)

    def set_params(self, params):
        merged = dict(self.init_params)
        merged.update(params)
        return merged

    # --- forward --- #
    def forward(self, input_ids, token_type_ids, attention_mask, params=None):
        # matches the PyTorch reference: falsy params -> reset path
        weights = self.set_params(params) if params else self.reset_params()
        logits, pooled = _base_model_call(
            jnp.asarray(input_ids), jnp.asarray(token_type_ids),
            jnp.asarray(attention_mask),
            self.embeddings, weights, num_labels=self.num_labels)
        return logits, pooled

    __call__ = forward

    # TODO(synk): train_step's autograd inner loop (torch.autograd.grad +
    # SGD fast-weight update) is host-side meta-learning control flow, not a
    # kernel; it is intentionally not reproduced here.


# ---------------------------------- main ----------------------------------- #
if __name__ == "__main__":
    key = jax.random.PRNGKey(0)
    k_model, k_ids, k_mask = jax.random.split(key, 3)

    B, S = 2, 8
    learner = Learner(k_model, vocab_size=100, type_vocab_size=2,
                      max_pos=16, hidden=32, intermediate=64, num_labels=1)

    input_ids = jax.random.randint(k_ids, (B, S), 0, 100, dtype=jnp.int32)
    token_type_ids = jnp.zeros((B, S), jnp.int32)
    attention_mask = jnp.ones((B, S), jnp.int32).at[1, 6:].set(0)

    # forward with params=None -> reset_params() path
    logits, pooled = learner(input_ids, token_type_ids, attention_mask)
    jax.block_until_ready((logits, pooled))

    # forward with an explicit fast-weight dict -> set_params() path
    fast = learner.get_params()
    fast['wc'] = fast['wc'] * 2.0
    logits2, pooled2 = learner(input_ids, token_type_ids, attention_mask,
                               params=fast)
    jax.block_until_ready((logits2, pooled2))

    assert logits.shape == (B, 1) and pooled.shape == (B, 32)
    assert bool(jnp.all(jnp.isfinite(logits))) and bool(jnp.all(jnp.isfinite(pooled)))
    assert bool(jnp.all(jnp.isfinite(logits2))) and bool(jnp.all(jnp.isfinite(pooled2)))
    # set_params(wc * 2) must change the classifier output but not pooled
    assert not bool(jnp.array_equal(logits, logits2))
    print("KERNEL_OK")
</pallas_src>

<mosaic_0001>
module attributes {stable_mosaic.version = 11 : i64} {
  func.func @encoder_kernel(%arg0: i32, %arg1: memref<1x8x1xi32, #tpu.memory_space<vmem>>, %arg2: memref<1x8x1xi32, #tpu.memory_space<vmem>>, %arg3: memref<1x1x8xf32, #tpu.memory_space<vmem>>, %arg4: memref<100x32xf32, #tpu.memory_space<vmem>>, %arg5: memref<2x32xf32, #tpu.memory_space<vmem>>, %arg6: memref<8x32xf32, #tpu.memory_space<vmem>>, %arg7: memref<5x32x32xbf16, #tpu.memory_space<vmem>>, %arg8: memref<32x64xbf16, #tpu.memory_space<vmem>>, %arg9: memref<1x64xf32, #tpu.memory_space<vmem>>, %arg10: memref<64x32xbf16, #tpu.memory_space<vmem>>, %arg11: memref<12x32xf32, #tpu.memory_space<vmem>>, %arg12: memref<32x128xf32, #tpu.memory_space<vmem>>, %arg13: memref<1x128xf32, #tpu.memory_space<vmem>>, %arg14: memref<1x1x128xf32, #tpu.memory_space<vmem>>) attributes {dimension_semantics = [#tpu.dimension_semantics<parallel>], iteration_bounds = array<i64: 2>, scalar_prefetch = 0 : i64, scratch_operands = 0 : i64, tpu.core_type = #tpu.core_type<tc>, window_params = [{transform_indices = @transform_0, window_bounds = array<i64: 1, 8, 1>}, {transform_indices = @transform_1, window_bounds = array<i64: 1, 8, 1>}, {transform_indices = @transform_2, window_bounds = array<i64: 1, 1, 8>}, {pipeline_mode = #tpu.pipeline_mode<synchronous>, transform_indices = @transform_3, window_bounds = array<i64: 100, 32>}, {pipeline_mode = #tpu.pipeline_mode<synchronous>, transform_indices = @transform_4, window_bounds = array<i64: 2, 32>}, {pipeline_mode = #tpu.pipeline_mode<synchronous>, transform_indices = @transform_5, window_bounds = array<i64: 8, 32>}, {pipeline_mode = #tpu.pipeline_mode<synchronous>, transform_indices = @transform_6, window_bounds = array<i64: 5, 32, 32>}, {pipeline_mode = #tpu.pipeline_mode<synchronous>, transform_indices = @transform_7, window_bounds = array<i64: 32, 64>}, {pipeline_mode = #tpu.pipeline_mode<synchronous>, transform_indices = @transform_8, window_bounds = array<i64: 1, 64>}, {pipeline_mode = #tpu.pipeline_mode<synchronous>, transform_indices = @transform_9, window_bounds = array<i64: 64, 32>}, {pipeline_mode = #tpu.pipeline_mode<synchronous>, transform_indices = @transform_10, window_bounds = array<i64: 12, 32>}, {pipeline_mode = #tpu.pipeline_mode<synchronous>, transform_indices = @transform_11, window_bounds = array<i64: 32, 128>}, {pipeline_mode = #tpu.pipeline_mode<synchronous>, transform_indices = @transform_12, window_bounds = array<i64: 1, 128>}, {transform_indices = @transform_13, window_bounds = array<i64: 1, 1, 128>}]} {
    %c0 = arith.constant 0 : index
    %c0_0 = arith.constant 0 : index
    %c0_1 = arith.constant 0 : index
    %0 = vector.load %arg1[%c0, %c0_0, %c0_1] : memref<1x8x1xi32, #tpu.memory_space<vmem>>, vector<1x8x1xi32>
    %1 = vector.shape_cast %0 : vector<1x8x1xi32> to vector<8x1xi32>
    %c0_2 = arith.constant 0 : index
    %c0_3 = arith.constant 0 : index
    %c0_4 = arith.constant 0 : index
    %2 = vector.load %arg2[%c0_2, %c0_3, %c0_4] : memref<1x8x1xi32, #tpu.memory_space<vmem>>, vector<1x8x1xi32>
    %3 = vector.shape_cast %2 : vector<1x8x1xi32> to vector<8x1xi32>
    %c0_5 = arith.constant 0 : index
    %c0_6 = arith.constant 0 : index
    %c0_7 = arith.constant 0 : index
    %4 = vector.load %arg3[%c0_5, %c0_6, %c0_7] : memref<1x1x8xf32, #tpu.memory_space<vmem>>, vector<1x1x8xf32>
    %5 = vector.shape_cast %4 : vector<1x1x8xf32> to vector<1x8xf32>
    %6 = tpu.iota {dimensions = array<i32: 1>} : vector<8x100xi32>
    %7 = vector.broadcast %1 : vector<8x1xi32> to vector<8x100xi32>
    %8 = arith.cmpi eq, %7, %6 : vector<8x100xi32>
    %9 = arith.extui %8 : vector<8x100xi1> to vector<8x100xi32>
    %10 = arith.sitofp %9 : vector<8x100xi32> to vector<8x100xf32>
    %c0_8 = arith.constant 0 : index
    %c0_9 = arith.constant 0 : index
    %11 = vector.load %arg4[%c0_8, %c0_9] : memref<100x32xf32, #tpu.memory_space<vmem>>, vector<100x32xf32>
    %cst = arith.constant dense<0.000000e+00> : vector<8x32xf32>
    %12 = tpu.matmul %10, %11, %cst {dimension_numbers = #tpu.dot_dimension_numbers<[1], [0], [0], [1], [0, 0, 1, 1], [], []>} : vector<8x100xf32>, vector<100x32xf32>, vector<8x32xf32> -> vector<8x32xf32>
    %c0_10 = arith.constant 0 : index
    %c0_11 = arith.constant 0 : index
    %13 = vector.load %arg5[%c0_10, %c0_11] : memref<2x32xf32, #tpu.memory_space<vmem>>, vector<2x32xf32>
    %c0_i32 = arith.constant 0 : i32
    %14 = vector.broadcast %c0_i32 : i32 to vector<8x1xi32>
    %15 = arith.cmpi eq, %3, %14 : vector<8x1xi32>
    %16 = arith.extui %15 : vector<8x1xi1> to vector<8x1xi32>
    %17 = arith.sitofp %16 : vector<8x1xi32> to vector<8x1xf32>
    %18 = vector.extract_strided_slice %13 {offsets = [0, 0], sizes = [1, 32], strides = [1, 1]} : vector<2x32xf32> to vector<1x32xf32>
    %19 = vector.broadcast %17 : vector<8x1xf32> to vector<8x32xf32>
    %20 = vector.broadcast %18 : vector<1x32xf32> to vector<8x32xf32>
    %21 = arith.mulf %19, %20 : vector<8x32xf32>
    %22 = arith.addf %12, %21 : vector<8x32xf32>
    %cst_12 = arith.constant 1.000000e+00 : f32
    %23 = vector.broadcast %cst_12 : f32 to vector<8x1xf32>
    %24 = arith.subf %23, %17 : vector<8x1xf32>
    %25 = vector.extract_strided_slice %13 {offsets = [1, 0], sizes = [1, 32], strides = [1, 1]} : vector<2x32xf32> to vector<1x32xf32>
    %26 = vector.broadcast %24 : vector<8x1xf32> to vector<8x32xf32>
    %27 = vector.broadcast %25 : vector<1x32xf32> to vector<8x32xf32>
    %28 = arith.mulf %26, %27 : vector<8x32xf32>
    %29 = arith.addf %22, %28 : vector<8x32xf32>
    %c0_13 = arith.constant 0 : index
    %c0_14 = arith.constant 0 : index
    %30 = vector.load %arg6[%c0_13, %c0_14] : memref<8x32xf32, #tpu.memory_space<vmem>>, vector<8x32xf32>
    %31 = arith.addf %29, %30 : vector<8x32xf32>
    %c0_15 = arith.constant 0 : index
    %c0_16 = arith.constant 0 : index
    %32 = vector.load %arg11[%c0_15, %c0_16] : memref<12x32xf32, #tpu.memory_space<vmem>>, vector<12x32xf32>
    %33 = vector.extract_strided_slice %32 {offsets = [0, 0], sizes = [1, 32], strides = [1, 1]} : vector<12x32xf32> to vector<1x32xf32>
    %34 = vector.extract_strided_slice %32 {offsets = [1, 0], sizes = [1, 32], strides = [1, 1]} : vector<12x32xf32> to vector<1x32xf32>
    %35 = vector.extract_strided_slice %32 {offsets = [2, 0], sizes = [1, 32], strides = [1, 1]} : vector<12x32xf32> to vector<1x32xf32>
    %36 = vector.extract_strided_slice %32 {offsets = [3, 0], sizes = [1, 32], strides = [1, 1]} : vector<12x32xf32> to vector<1x32xf32>
    %37 = vector.extract_strided_slice %32 {offsets = [4, 0], sizes = [1, 32], strides = [1, 1]} : vector<12x32xf32> to vector<1x32xf32>
    %38 = vector.extract_strided_slice %32 {offsets = [5, 0], sizes = [1, 32], strides = [1, 1]} : vector<12x32xf32> to vector<1x32xf32>
    %39 = vector.extract_strided_slice %32 {offsets = [6, 0], sizes = [1, 32], strides = [1, 1]} : vector<12x32xf32> to vector<1x32xf32>
    %40 = vector.extract_strided_slice %32 {offsets = [7, 0], sizes = [1, 32], strides = [1, 1]} : vector<12x32xf32> to vector<1x32xf32>
    %41 = vector.extract_strided_slice %32 {offsets = [8, 0], sizes = [1, 32], strides = [1, 1]} : vector<12x32xf32> to vector<1x32xf32>
    %42 = vector.extract_strided_slice %32 {offsets = [9, 0], sizes = [1, 32], strides = [1, 1]} : vector<12x32xf32> to vector<1x32xf32>
    %43 = vector.extract_strided_slice %32 {offsets = [10, 0], sizes = [1, 32], strides = [1, 1]} : vector<12x32xf32> to vector<1x32xf32>
    %44 = vector.extract_strided_slice %32 {offsets = [11, 0], sizes = [1, 32], strides = [1, 1]} : vector<12x32xf32> to vector<1x32xf32>
    %cst_17 = arith.constant dense<0.000000e+00> : vector<8xf32>
    %45 = vector.multi_reduction <add>, %31, %cst_17 [1] : vector<8x32xf32> to vector<8xf32>
    %46 = vector.shape_cast %45 : vector<8xf32> to vector<8x1xf32>
    %cst_18 = arith.constant 3.200000e+01 : f32
    %47 = vector.broadcast %cst_18 : f32 to vector<8x1xf32>
    %48 = arith.divf %46, %47 : vector<8x1xf32>
    %49 = vector.broadcast %48 : vector<8x1xf32> to vector<8x32xf32>
    %50 = arith.subf %31, %49 : vector<8x32xf32>
    %51 = vector.broadcast %48 : vector<8x1xf32> to vector<8x32xf32>
    %52 = arith.subf %31, %51 : vector<8x32xf32>
    %53 = arith.mulf %50, %52 : vector<8x32xf32>
    %cst_19 = arith.constant dense<0.000000e+00> : vector<8xf32>
    %54 = vector.multi_reduction <add>, %53, %cst_19 [1] : vector<8x32xf32> to vector<8xf32>
    %55 = vector.shape_cast %54 : vector<8xf32> to vector<8x1xf32>
    %cst_20 = arith.constant 3.200000e+01 : f32
    %56 = vector.broadcast %cst_20 : f32 to vector<8x1xf32>
    %57 = arith.divf %55, %56 : vector<8x1xf32>
    %58 = vector.broadcast %48 : vector<8x1xf32> to vector<8x32xf32>
    %59 = arith.subf %31, %58 : vector<8x32xf32>
    %cst_21 = arith.constant 9.99999996E-13 : f32
    %60 = vector.broadcast %cst_21 : f32 to vector<8x1xf32>
    %61 = arith.addf %57, %60 : vector<8x1xf32>
    %62 = math.rsqrt %61 : vector<8x1xf32>
    %63 = vector.broadcast %62 : vector<8x1xf32> to vector<8x32xf32>
    %64 = arith.mulf %59, %63 : vector<8x32xf32>
    %65 = vector.broadcast %33 : vector<1x32xf32> to vector<8x32xf32>
    %66 = arith.mulf %64, %65 : vector<8x32xf32>
    %67 = vector.broadcast %34 : vector<1x32xf32> to vector<8x32xf32>
    %68 = arith.addf %66, %67 : vector<8x32xf32>
    %69 = arith.truncf %68 : vector<8x32xf32> to vector<8x32xbf16>
    %c0_22 = arith.constant 0 : index
    %c0_23 = arith.constant 0 : index
    %c0_24 = arith.constant 0 : index
    %70 = vector.load %arg7[%c0_22, %c0_23, %c0_24] : memref<5x32x32xbf16, #tpu.memory_space<vmem>>, vector<1x32x32xbf16>
    %71 = vector.shape_cast %70 : vector<1x32x32xbf16> to vector<32x32xbf16>
    %cst_25 = arith.constant dense<0.000000e+00> : vector<8x32xf32>
    %72 = tpu.matmul %69, %71, %cst_25 {dimension_numbers = #tpu.dot_dimension_numbers<[1], [0], [0], [1], [0, 0, 1, 1], [], []>} : vector<8x32xbf16>, vector<32x32xbf16>, vector<8x32xf32> -> vector<8x32xf32>
    %73 = vector.broadcast %35 : vector<1x32xf32> to vector<8x32xf32>
    %74 = arith.addf %72, %73 : vector<8x32xf32>
    %c1 = arith.constant 1 : index
    %c0_26 = arith.constant 0 : index
    %c0_27 = arith.constant 0 : index
    %75 = vector.load %arg7[%c1, %c0_26, %c0_27] : memref<5x32x32xbf16, #tpu.memory_space<vmem>>, vector<1x32x32xbf16>
    %76 = vector.shape_cast %75 : vector<1x32x32xbf16> to vector<32x32xbf16>
    %cst_28 = arith.constant dense<0.000000e+00> : vector<8x32xf32>
    %77 = tpu.matmul %69, %76, %cst_28 {dimension_numbers = #tpu.dot_dimension_numbers<[1], [0], [0], [1], [0, 0, 1, 1], [], []>} : vector<8x32xbf16>, vector<32x32xbf16>, vector<8x32xf32> -> vector<8x32xf32>
    %78 = vector.broadcast %36 : vector<1x32xf32> to vector<8x32xf32>
    %79 = arith.addf %77, %78 : vector<8x32xf32>
    %c2 = arith.constant 2 : index
    %c0_29 = arith.constant 0 : index
    %c0_30 = arith.constant 0 : index
    %80 = vector.load %arg7[%c2, %c0_29, %c0_30] : memref<5x32x32xbf16, #tpu.memory_space<vmem>>, vector<1x32x32xbf16>
    %81 = vector.shape_cast %80 : vector<1x32x32xbf16> to vector<32x32xbf16>
    %cst_31 = arith.constant dense<0.000000e+00> : vector<8x32xf32>
    %82 = tpu.matmul %69, %81, %cst_31 {dimension_numbers = #tpu.dot_dimension_numbers<[1], [0], [0], [1], [0, 0, 1, 1], [], []>} : vector<8x32xbf16>, vector<32x32xbf16>, vector<8x32xf32> -> vector<8x32xf32>
    %83 = vector.broadcast %37 : vector<1x32xf32> to vector<8x32xf32>
    %84 = arith.addf %82, %83 : vector<8x32xf32>
    %85 = arith.truncf %74 : vector<8x32xf32> to vector<8x32xbf16>
    %86 = arith.truncf %79 : vector<8x32xf32> to vector<8x32xbf16>
    %cst_32 = arith.constant dense<0.000000e+00> : vector<8x8xf32>
    %87 = tpu.matmul %85, %86, %cst_32 {dimension_numbers = #tpu.dot_dimension_numbers<[1], [1], [0], [0], [0, 0, 1, 0], [], []>} : vector<8x32xbf16>, vector<8x32xbf16>, vector<8x8xf32> -> vector<8x8xf32>
    %cst_33 = arith.constant 0.176776692 : f32
    %88 = vector.broadcast %cst_33 : f32 to vector<8x8xf32>
    %89 = arith.mulf %87, %88 : vector<8x8xf32>
    %cst_34 = arith.constant 1.000000e+00 : f32
    %90 = vector.broadcast %cst_34 : f32 to vector<1x8xf32>
    %91 = arith.subf %90, %5 : vector<1x8xf32>
    %cst_35 = arith.constant -1.000000e+09 : f32
    %92 = vector.broadcast %cst_35 : f32 to vector<1x8xf32>
    %93 = arith.mulf %91, %92 : vector<1x8xf32>
    %94 = vector.broadcast %93 : vector<1x8xf32> to vector<8x8xf32>
    %95 = arith.addf %89, %94 : vector<8x8xf32>
    %cst_36 = arith.constant dense<0xFF800000> : vector<8xf32>
    %96 = vector.multi_reduction <maximumf>, %95, %cst_36 [1] : vector<8x8xf32> to vector<8xf32>
    %97 = vector.shape_cast %96 : vector<8xf32> to vector<8x1xf32>
    %98 = vector.broadcast %97 : vector<8x1xf32> to vector<8x8xf32>
    %99 = arith.subf %95, %98 : vector<8x8xf32>
    %100 = math.exp %99 : vector<8x8xf32>
    %cst_37 = arith.constant dense<0.000000e+00> : vector<8xf32>
    %101 = vector.multi_reduction <add>, %100, %cst_37 [1] : vector<8x8xf32> to vector<8xf32>
    %102 = vector.shape_cast %101 : vector<8xf32> to vector<8x1xf32>
    %103 = vector.broadcast %102 : vector<8x1xf32> to vector<8x8xf32>
    %104 = arith.divf %100, %103 : vector<8x8xf32>
    %105 = arith.truncf %104 : vector<8x8xf32> to vector<8x8xbf16>
    %106 = arith.truncf %84 : vector<8x32xf32> to vector<8x32xbf16>
    %cst_38 = arith.constant dense<0.000000e+00> : vector<8x32xf32>
    %107 = tpu.matmul %105, %106, %cst_38 {dimension_numbers = #tpu.dot_dimension_numbers<[1], [0], [0], [1], [0, 0, 1, 1], [], []>} : vector<8x8xbf16>, vector<8x32xbf16>, vector<8x32xf32> -> vector<8x32xf32>
    %108 = arith.truncf %107 : vector<8x32xf32> to vector<8x32xbf16>
    %c3 = arith.constant 3 : index
    %c0_39 = arith.constant 0 : index
    %c0_40 = arith.constant 0 : index
    %109 = vector.load %arg7[%c3, %c0_39, %c0_40] : memref<5x32x32xbf16, #tpu.memory_space<vmem>>, vector<1x32x32xbf16>
    %110 = vector.shape_cast %109 : vector<1x32x32xbf16> to vector<32x32xbf16>
    %cst_41 = arith.constant dense<0.000000e+00> : vector<8x32xf32>
    %111 = tpu.matmul %108, %110, %cst_41 {dimension_numbers = #tpu.dot_dimension_numbers<[1], [0], [0], [1], [0, 0, 1, 1], [], []>} : vector<8x32xbf16>, vector<32x32xbf16>, vector<8x32xf32> -> vector<8x32xf32>
    %112 = vector.broadcast %38 : vector<1x32xf32> to vector<8x32xf32>
    %113 = arith.addf %111, %112 : vector<8x32xf32>
    %114 = arith.addf %68, %113 : vector<8x32xf32>
    %cst_42 = arith.constant dense<0.000000e+00> : vector<8xf32>
    %115 = vector.multi_reduction <add>, %114, %cst_42 [1] : vector<8x32xf32> to vector<8xf32>
    %116 = vector.shape_cast %115 : vector<8xf32> to vector<8x1xf32>
    %cst_43 = arith.constant 3.200000e+01 : f32
    %117 = vector.broadcast %cst_43 : f32 to vector<8x1xf32>
    %118 = arith.divf %116, %117 : vector<8x1xf32>
    %119 = vector.broadcast %118 : vector<8x1xf32> to vector<8x32xf32>
    %120 = arith.subf %114, %119 : vector<8x32xf32>
    %121 = vector.broadcast %118 : vector<8x1xf32> to vector<8x32xf32>
    %122 = arith.subf %114, %121 : vector<8x32xf32>
    %123 = arith.mulf %120, %122 : vector<8x32xf32>
    %cst_44 = arith.constant dense<0.000000e+00> : vector<8xf32>
    %124 = vector.multi_reduction <add>, %123, %cst_44 [1] : vector<8x32xf32> to vector<8xf32>
    %125 = vector.shape_cast %124 : vector<8xf32> to vector<8x1xf32>
    %cst_45 = arith.constant 3.200000e+01 : f32
    %126 = vector.broadcast %cst_45 : f32 to vector<8x1xf32>
    %127 = arith.divf %125, %126 : vector<8x1xf32>
    %128 = vector.broadcast %118 : vector<8x1xf32> to vector<8x32xf32>
    %129 = arith.subf %114, %128 : vector<8x32xf32>
    %cst_46 = arith.constant 9.99999996E-13 : f32
    %130 = vector.broadcast %cst_46 : f32 to vector<8x1xf32>
    %131 = arith.addf %127, %130 : vector<8x1xf32>
    %132 = math.rsqrt %131 : vector<8x1xf32>
    %133 = vector.broadcast %132 : vector<8x1xf32> to vector<8x32xf32>
    %134 = arith.mulf %129, %133 : vector<8x32xf32>
    %135 = vector.broadcast %39 : vector<1x32xf32> to vector<8x32xf32>
    %136 = arith.mulf %134, %135 : vector<8x32xf32>
    %137 = vector.broadcast %40 : vector<1x32xf32> to vector<8x32xf32>
    %138 = arith.addf %136, %137 : vector<8x32xf32>
    %139 = arith.truncf %138 : vector<8x32xf32> to vector<8x32xbf16>
    %c0_47 = arith.constant 0 : index
    %c0_48 = arith.constant 0 : index
    %140 = vector.load %arg8[%c0_47, %c0_48] : memref<32x64xbf16, #tpu.memory_space<vmem>>, vector<32x64xbf16>
    %cst_49 = arith.constant dense<0.000000e+00> : vector<8x64xf32>
    %141 = tpu.matmul %139, %140, %cst_49 {dimension_numbers = #tpu.dot_dimension_numbers<[1], [0], [0], [1], [0, 0, 1, 1], [], []>} : vector<8x32xbf16>, vector<32x64xbf16>, vector<8x64xf32> -> vector<8x64xf32>
    %c0_50 = arith.constant 0 : index
    %c0_51 = arith.constant 0 : index
    %142 = vector.load %arg9[%c0_50, %c0_51] : memref<1x64xf32, #tpu.memory_space<vmem>>, vector<1x64xf32>
    %143 = vector.broadcast %142 : vector<1x64xf32> to vector<8x64xf32>
    %144 = arith.addf %141, %143 : vector<8x64xf32>
    %145 = arith.mulf %144, %144 : vector<8x64xf32>
    %146 = arith.mulf %144, %145 : vector<8x64xf32>
    %cst_52 = arith.constant 4.471500e-02 : f32
    %147 = vector.broadcast %cst_52 : f32 to vector<8x64xf32>
    %148 = arith.mulf %147, %146 : vector<8x64xf32>
    %149 = arith.addf %144, %148 : vector<8x64xf32>
    %cst_53 = arith.constant 0.797884583 : f32
    %150 = vector.broadcast %cst_53 : f32 to vector<8x64xf32>
    %151 = arith.mulf %150, %149 : vector<8x64xf32>
    %152 = math.tanh %151 : vector<8x64xf32>
    %cst_54 = arith.constant 1.000000e+00 : f32
    %153 = vector.broadcast %cst_54 : f32 to vector<8x64xf32>
    %154 = arith.addf %153, %152 : vector<8x64xf32>
    %cst_55 = arith.constant 5.000000e-01 : f32
    %155 = vector.broadcast %cst_55 : f32 to vector<8x64xf32>
    %156 = arith.mulf %155, %154 : vector<8x64xf32>
    %157 = arith.mulf %144, %156 : vector<8x64xf32>
    %158 = arith.truncf %157 : vector<8x64xf32> to vector<8x64xbf16>
    %c0_56 = arith.constant 0 : index
    %c0_57 = arith.constant 0 : index
    %159 = vector.load %arg10[%c0_56, %c0_57] : memref<64x32xbf16, #tpu.memory_space<vmem>>, vector<64x32xbf16>
    %cst_58 = arith.constant dense<0.000000e+00> : vector<8x32xf32>
    %160 = tpu.matmul %158, %159, %cst_58 {dimension_numbers = #tpu.dot_dimension_numbers<[1], [0], [0], [1], [0, 0, 1, 1], [], []>} : vector<8x64xbf16>, vector<64x32xbf16>, vector<8x32xf32> -> vector<8x32xf32>
    %161 = vector.broadcast %41 : vector<1x32xf32> to vector<8x32xf32>
    %162 = arith.addf %160, %161 : vector<8x32xf32>
    %163 = arith.addf %138, %162 : vector<8x32xf32>
    %cst_59 = arith.constant dense<0.000000e+00> : vector<8xf32>
    %164 = vector.multi_reduction <add>, %163, %cst_59 [1] : vector<8x32xf32> to vector<8xf32>
    %165 = vector.shape_cast %164 : vector<8xf32> to vector<8x1xf32>
    %cst_60 = arith.constant 3.200000e+01 : f32
    %166 = vector.broadcast %cst_60 : f32 to vector<8x1xf32>
    %167 = arith.divf %165, %166 : vector<8x1xf32>
    %168 = vector.broadcast %167 : vector<8x1xf32> to vector<8x32xf32>
    %169 = arith.subf %163, %168 : vector<8x32xf32>
    %170 = vector.broadcast %167 : vector<8x1xf32> to vector<8x32xf32>
    %171 = arith.subf %163, %170 : vector<8x32xf32>
    %172 = arith.mulf %169, %171 : vector<8x32xf32>
    %cst_61 = arith.constant dense<0.000000e+00> : vector<8xf32>
    %173 = vector.multi_reduction <add>, %172, %cst_61 [1] : vector<8x32xf32> to vector<8xf32>
    %174 = vector.shape_cast %173 : vector<8xf32> to vector<8x1xf32>
    %cst_62 = arith.constant 3.200000e+01 : f32
    %175 = vector.broadcast %cst_62 : f32 to vector<8x1xf32>
    %176 = arith.divf %174, %175 : vector<8x1xf32>
    %177 = vector.broadcast %167 : vector<8x1xf32> to vector<8x32xf32>
    %178 = arith.subf %163, %177 : vector<8x32xf32>
    %cst_63 = arith.constant 9.99999996E-13 : f32
    %179 = vector.broadcast %cst_63 : f32 to vector<8x1xf32>
    %180 = arith.addf %176, %179 : vector<8x1xf32>
    %181 = math.rsqrt %180 : vector<8x1xf32>
    %182 = vector.broadcast %181 : vector<8x1xf32> to vector<8x32xf32>
    %183 = arith.mulf %178, %182 : vector<8x32xf32>
    %184 = vector.broadcast %42 : vector<1x32xf32> to vector<8x32xf32>
    %185 = arith.mulf %183, %184 : vector<8x32xf32>
    %186 = vector.broadcast %43 : vector<1x32xf32> to vector<8x32xf32>
    %187 = arith.addf %185, %186 : vector<8x32xf32>
    %188 = vector.extract_strided_slice %187 {offsets = [0, 0], sizes = [1, 32], strides = [1, 1]} : vector<8x32xf32> to vector<1x32xf32>
    %189 = arith.truncf %188 : vector<1x32xf32> to vector<1x32xbf16>
    %c4 = arith.constant 4 : index
    %c0_64 = arith.constant 0 : index
    %c0_65 = arith.constant 0 : index
    %190 = vector.load %arg7[%c4, %c0_64, %c0_65] : memref<5x32x32xbf16, #tpu.memory_space<vmem>>, vector<1x32x32xbf16>
    %191 = vector.shape_cast %190 : vector<1x32x32xbf16> to vector<32x32xbf16>
    %cst_66 = arith.constant dense<0.000000e+00> : vector<1x32xf32>
    %192 = tpu.matmul %189, %191, %cst_66 {dimension_numbers = #tpu.dot_dimension_numbers<[1], [0], [0], [1], [0, 0, 1, 1], [], []>} : vector<1x32xbf16>, vector<32x32xbf16>, vector<1x32xf32> -> vector<1x32xf32>
    %193 = arith.addf %192, %44 : vector<1x32xf32>
    %194 = math.tanh %193 : vector<1x32xf32>
    %c0_67 = arith.constant 0 : index
    %c0_68 = arith.constant 0 : index
    %195 = vector.load %arg12[%c0_67, %c0_68] : memref<32x128xf32, #tpu.memory_space<vmem>>, vector<32x128xf32>
    %cst_69 = arith.constant dense<0.000000e+00> : vector<1x128xf32>
    %196 = tpu.matmul %194, %195, %cst_69 {dimension_numbers = #tpu.dot_dimension_numbers<[1], [0], [0], [1], [0, 0, 1, 1], [], []>} : vector<1x32xf32>, vector<32x128xf32>, vector<1x128xf32> -> vector<1x128xf32>
    %c0_70 = arith.constant 0 : index
    %c0_71 = arith.constant 0 : index
    %197 = vector.load %arg13[%c0_70, %c0_71] : memref<1x128xf32, #tpu.memory_space<vmem>>, vector<1x128xf32>
    %198 = arith.addf %196, %197 : vector<1x128xf32>
    %199 = vector.shape_cast %198 : vector<1x128xf32> to vector<1x1x128xf32>
    %c0_72 = arith.constant 0 : index
    %c0_73 = arith.constant 0 : index
    %c0_74 = arith.constant 0 : index
    %200 = vector.load %arg14[%c0_72, %c0_73, %c0_74] : memref<1x1x128xf32, #tpu.memory_space<vmem>>, vector<1x1x128xf32>
    tpu.vector_store %arg14[%c0_72, %c0_73, %c0_74], %199 {strides = array<i32>} : memref<1x1x128xf32, #tpu.memory_space<vmem>>, vector<1x1x128xf32>,
    return
  }
  func.func @transform_0(%arg0: i32) -> (i32, i32, i32) {
    %c0_i32 = arith.constant 0 : i32
    %c0_i32_0 = arith.constant 0 : i32
    %c0_i32_1 = arith.constant 0 : i32
    return %arg0, %c0_i32, %c0_i32_0 : i32, i32, i32
  }
  func.func @transform_1(%arg0: i32) -> (i32, i32, i32) {
    %c0_i32 = arith.constant 0 : i32
    %c0_i32_0 = arith.constant 0 : i32
    %c0_i32_1 = arith.constant 0 : i32
    return %arg0, %c0_i32, %c0_i32_0 : i32, i32, i32
  }
  func.func @transform_2(%arg0: i32) -> (i32, i32, i32) {
    %c0_i32 = arith.constant 0 : i32
    %c0_i32_0 = arith.constant 0 : i32
    %c0_i32_1 = arith.constant 0 : i32
    return %arg0, %c0_i32, %c0_i32_0 : i32, i32, i32
  }
  func.func @transform_3(%arg0: i32) -> (i32, i32) {
    %c0_i32 = arith.constant 0 : i32
    %c0_i32_0 = arith.constant 0 : i32
    %c0_i32_1 = arith.constant 0 : i32
    return %c0_i32, %c0_i32_0 : i32, i32
  }
  func.func @transform_4(%arg0: i32) -> (i32, i32) {
    %c0_i32 = arith.constant 0 : i32
    %c0_i32_0 = arith.constant 0 : i32
    %c0_i32_1 = arith.constant 0 : i32
    return %c0_i32, %c0_i32_0 : i32, i32
  }
  func.func @transform_5(%arg0: i32) -> (i32, i32) {
    %c0_i32 = arith.constant 0 : i32
    %c0_i32_0 = arith.constant 0 : i32
    %c0_i32_1 = arith.constant 0 : i32
    return %c0_i32, %c0_i32_0 : i32, i32
  }
  func.func @transform_6(%arg0: i32) -> (i32, i32, i32) {
    %c0_i32 = arith.constant 0 : i32
    %c0_i32_0 = arith.constant 0 : i32
    %c0_i32_1 = arith.constant 0 : i32
    %c0_i32_2 = arith.constant 0 : i32
    return %c0_i32, %c0_i32_0, %c0_i32_1 : i32, i32, i32
  }
  func.func @transform_7(%arg0: i32) -> (i32, i32) {
    %c0_i32 = arith.constant 0 : i32
    %c0_i32_0 = arith.constant 0 : i32
    %c0_i32_1 = arith.constant 0 : i32
    return %c0_i32, %c0_i32_0 : i32, i32
  }
  func.func @transform_8(%arg0: i32) -> (i32, i32) {
    %c0_i32 = arith.constant 0 : i32
    %c0_i32_0 = arith.constant 0 : i32
    %c0_i32_1 = arith.constant 0 : i32
    return %c0_i32, %c0_i32_0 : i32, i32
  }
  func.func @transform_9(%arg0: i32) -> (i32, i32) {
    %c0_i32 = arith.constant 0 : i32
    %c0_i32_0 = arith.constant 0 : i32
    %c0_i32_1 = arith.constant 0 : i32
    return %c0_i32, %c0_i32_0 : i32, i32
  }
  func.func @transform_10(%arg0: i32) -> (i32, i32) {
    %c0_i32 = arith.constant 0 : i32
    %c0_i32_0 = arith.constant 0 : i32
    %c0_i32_1 = arith.constant 0 : i32
    return %c0_i32, %c0_i32_0 : i32, i32
  }
  func.func @transform_11(%arg0: i32) -> (i32, i32) {
    %c0_i32 = arith.constant 0 : i32
    %c0_i32_0 = arith.constant 0 : i32
    %c0_i32_1 = arith.constant 0 : i32
    return %c0_i32, %c0_i32_0 : i32, i32
  }
  func.func @transform_12(%arg0: i32) -> (i32, i32) {
    %c0_i32 = arith.constant 0 : i32
    %c0_i32_0 = arith.constant 0 : i32
    %c0_i32_1 = arith.constant 0 : i32
    return %c0_i32, %c0_i32_0 : i32, i32
  }
  func.func @transform_13(%arg0: i32) -> (i32, i32, i32) {
    %c0_i32 = arith.constant 0 : i32
    %c0_i32_0 = arith.constant 0 : i32
    %c0_i32_1 = arith.constant 0 : i32
    return %arg0, %c0_i32, %c0_i32_0 : i32, i32, i32
  }
}

</mosaic_0001>

<bundles_post_ra>
// kernel: _base_model_call.1
= control target key start
LH: loop header
LB: loop body
LE: loop exit
PB: predicated region body
PF: predicated region fallthrough
CT: control target
= control target key end

     0   :  { %s1773_s25 = smov 0   ;;  %s2029_s0 = inlined_call_operand.vmem [shape: s32[2,8,1], index: 0, kind: input, shape index: {}]   ;;  %s2030_s1 = inlined_call_operand.vmem [shape: s32[2,8,1], index: 1, kind: input, shape index: {}]   ;;  %s2031_s2 = inlined_call_operand.vmem [shape: f32[2,1,8], index: 2, kind: input, shape index: {}]   ;;  %s2032_s3 = inlined_call_operand.vmem [shape: f32[100,32], index: 3, kind: input, shape index: {}]   ;;  %s2033_s4 = inlined_call_operand.vmem [shape: f32[2,32], index: 4, kind: input, shape index: {}]   ;;  %s2034_s5 = inlined_call_operand.vmem [shape: f32[8,32], index: 5, kind: input, shape index: {}]   ;;  %s2035_s6 = inlined_call_operand.vmem [shape: bf16[5,32,32], index: 6, kind: input, shape index: {}]   ;;  %s2036_s7 = inlined_call_operand.vmem [shape: bf16[32,64], index: 7, kind: input, shape index: {}]   ;;  %s2037_s8 = inlined_call_operand.vmem [shape: f32[1,64], index: 8, kind: input, shape index: {}]   ;;  %s2038_s9 = inlined_call_operand.vmem [shape: bf16[64,32], index: 9, kind: input, shape index: {}]   ;;  %s2039_s10 = inlined_call_operand.vmem [shape: f32[12,32], index: 10, kind: input, shape index: {}]   ;;  %s2040_s11 = inlined_call_operand.vmem [shape: f32[32,128], index: 11, kind: input, shape index: {}]   ;;  %s2041_s12 = inlined_call_operand.vmem [shape: f32[1,128], index: 12, kind: input, shape index: {}]   ;;  %s2042_s13 = inlined_call_operand.vmem [shape: f32[2,1,128], index: 13, kind: output, shape index: {}]  }
   0x1 LB: > { %s1409_s26 = sadd.s32 4294967295, %s1697_s25   ;;  %p1413_p0 = scmp.ge.s32.totalorder %s1697_s25, 1  ;;  %s1697_s25 = sphi %s1773_s25, %s23_s25  }
   0x2   : > { %p403_p1 = scmp.lt.s32.totalorder %s1697_s25, 3 }
   0x4   : > { %p404_p2 = pnand %p1413_p0, %p403_p1 }
   0x5   : > { %p451_p3 = scmp.lt.s32.totalorder (!%p404_p2), %s1409_s26, 1  ;;  %v477_v0 = vld [vmem:[%s2032_s3] sm:$0xff] (!%p404_p2)  ;;  %v478_v1 = vld [vmem:[%s2032_s3 + $0x8] sm:$0xff] (!%p404_p2)  ;;  %v1699_v2 = vmov (!%p404_p2), 0   ;;  %v1700_v3 = vmov (!%p404_p2), 0.0|0.0   ;;  %v479_v5 = vld [vmem:[%s2032_s3 + $0x10] sm:$0xff] (!%p404_p2)  ;;  %v469_v26 = vlaneseq (!%p404_p2) }
   0x6   : > { %407 = sbr.rel (%p404_p2) target bundleno = 3403 (0xd4b), region = 72  ;;  %1659 = vset.pattern.permute.xlu0 (!%p404_p2), %v1699_v2  ;;  %1623 = vmatprep.subr.bf16.mxu0 (!%p404_p2), %v1700_v3  ;;  %v1624_v4 = vpack.c.bf16 (!%p404_p2), %v478_v1, %v477_v0  ;;  %v480_v6 = vld [vmem:[%s2032_s3 + $0x18] sm:$0xff] (!%p404_p2)  ;;  %v1701_v7 = vmov (!%p404_p2), 0.0   ;;  %v481_v9 = vld [vmem:[%s2032_s3 + $0x20] sm:$0xff] (!%p404_p2)  ;;  %v482_v10 = vld [vmem:[%s2032_s3 + $0x28] sm:$0xff] (!%p404_p2)  ;;  %vm1702_vm1 = vmmov (!%p404_p2), 0  }
   0x7   : > { %1660 = vset.pattern.permute.xlu1 (!%p404_p2), %v1699_v2  ;;  %1540 = vmatprep.subr.bf16.mxu1 (!%p404_p2), %v1701_v7  ;;  %v1627_v8 = vpack.c.bf16 (!%p404_p2), %v480_v6, %v479_v5  ;;  %v1630_v13 = vpack.c.bf16 (!%p404_p2), %v482_v10, %v481_v9  ;;  %v483_v15 = vld [vmem:[%s2032_s3 + $0x30] sm:$0xff] (!%p404_p2)  ;;  %v484_v16 = vld [vmem:[%s2032_s3 + $0x38] sm:$0xff] (!%p404_p2)  ;;  %v485_v17 = vld [vmem:[%s2032_s3 + $0x40] sm:$0xff] (!%p404_p2)  ;;  %vm508_vm2 = vcmask (!%p404_p2), 1043456   ;;  %v470_v27 = vand.u32 (!%p404_p2), 127, %v469_v26 }
   0x8   : > { %1625 = vmatpush3.bf16.msra.mxu0 (!%p404_p2), %v1624_v4  ;;  %1537 = vmatprep.mubr.msk.f32.mxu0 (!%p404_p2), %vm1702_vm1, %v1701_v7  ;;  %v1633_v18 = vpack.c.bf16 (!%p404_p2), %v484_v16, %v483_v15  ;;  %v486_v19 = vld [vmem:[%s2032_s3 + $0x48] sm:$0xff] (!%p404_p2)  ;;  %v487_v21 = vld [vmem:[%s2032_s3 + $0x50] sm:$0xff] (!%p404_p2)  ;;  %v488_v22 = vld [vmem:[%s2032_s3 + $0x58] sm:$0xff] (!%p404_p2)  ;;  %vm504_vm3 = vcmask (!%p404_p2), 818176   ;;  %v1847_v30 = vshrl.u32 (!%p404_p2), %v469_v26, 7  ;;  %vm598_vm5 = vcmask (!%p404_p2), 261120  }
   0x9   : > { %1626 = vmatprep.subr.bf16.mxu0 (!%p404_p2), %v1700_v3  ;;  %1544 = vmatprep.mubr.msk.bf16.mxu1 (!%p404_p2), %vm1702_vm1, %v1701_v7  ;;  %v1636_v23 = vpack.c.bf16 (!%p404_p2), %v486_v19, %v485_v17  ;;  %v1639_v24 = vpack.c.bf16 (!%p404_p2), %v488_v22, %v487_v21  ;;  %v489_v25 = vld [vmem:[%s2032_s3 + $0x60] sm:$0xf] (!%p404_p2)  ;;  %v1662_v53 = vld [vmem:[%s2035_s6 + $0x8] sm:$0xff] (!%p404_p2)   ;;  %v1663_v0 = vld [vmem:[%s2035_s6 + $0x10] sm:$0xff] (!%p404_p2)   ;;  %vm867_vm6 = vcmask (!%p404_p2), 64512   ;;  %vm1129_vm7 = vcmask (!%p404_p2), 523264  }
   0xa   : > { %v1850_v31 = vsub.s32 (!%p404_p2), 0, %v1847_v30  ;;  %v1853_v32 = vsub.s32 (!%p404_p2), 1, %v1847_v30  ;;  %v490_v33 = vld [vmem:[%s2033_s4] sm:$0x3] (!%p404_p2)  ;;  %v1664_v2 = vld [vmem:[%s2035_s6 + $0x18] sm:$0xff] (!%p404_p2)   ;;  %v1666_v5 = vld [vmem:[%s2035_s6 + $0x28] sm:$0xff] (!%p404_p2)  }
   0xb   : > { %v594_v43 = vld [vmem:[%s2034_s5] sm:$0xff] (!%p404_p2)  ;;  %v694_v9 = vsub.s32 (!%p404_p2), 3, %v1847_v30  ;;  %v755_v17 = vsub.s32 (!%p404_p2), 4, %v1847_v30 }
   0xc   : > { %1628 = vmatpush3.bf16.msra.mxu0 (!%p404_p2), %v1627_v8  ;;  %v502_v34 = vrot.slane (!%p404_p2), %v490_v33, %v1850_v31  ;;  %v591_v35 = vrot.slane (!%p404_p2), %v490_v33, %v1853_v32  ;;  %v1661_v52 = vld [vmem:[%s2035_s6] sm:$0xff] (!%p404_p2)  }
   0xd   : > { %s2044_s26 = smov (!%p451_p3, %s1409_s26), 1  ;;  %1629 = vmatprep.subr.bf16.mxu0 %v1700_v3  ;;  %1541 = vmatpush3.bf16.msra.mxu1 %v1661_v52  ;;  %v1876_v57 = vld [vmem:[%s2039_s10] sm:$0xff] }
   0xe   : > { %s1414_s20 = sshll.u32 %s2044_s26, 3  ;;  %1542 = vmatprep.subr.bf16.mxu1 %v1701_v7  ;;  %v616_v58 = vrot.slane %v1876_v57, %v1850_v31  ;;  %v621_v61 = vrot.slane %v1876_v57, %v1853_v32  ;;  %v1665_v4 = vld [vmem:[%s2035_s6 + $0x20] sm:$0xff]   ;;  %s461_s18 = scalar_lea.vmem %s2031_s2, %s2044_s26 }
   0xf   : > { %s454_s27 = scalar_lea.vmem %s2029_s0, %s1414_s20  ;;  %s458_s30 = scalar_lea.vmem %s2030_s1, %s1414_s20 }
  0x10   : > { %v466_v11 = vld [vmem:[%s454_s27] sm:$0xff]  ;;  %1631 = vmatpush3.bf16.msra.mxu0 %v1630_v13  ;;  %v630_v13 = vsub.s32 2, %v1847_v30  ;;  %s464_s27 = scalar_lea.vmem %s2042_s13, %s2044_s26 }
  0x11   : > { %v467_v12 = vld [vmem:[%s458_s30] sm:$0xff]  ;;  %472 = vperm.xlu0 %1659, %v466_v11   ;;  %1632 = vmatprep.subr.bf16.mxu0 %v1700_v3 }
  0x12   : > { %vm491_vm0 = vcmp.eq.s32.totalorder %v467_v12, 0  ;;  %1543 = vmatpush3.bf16.msra.mxu1 %v1662_v53  ;;  %v695_v12 = vrot.slane %v1876_v57, %v694_v9  ;;  %v631_v19 = vrot.slane %v1876_v57, %v630_v13 }
  0x13   : > { %v1417_v14 = vsel %vm491_vm0, 1.0, %v1701_v7  ;;  %1548 = vmatprep.subr.bf16.mxu1 %v1701_v7 }
  0x14   : > { %v582_v20 = vsub.f32 1.0, %v1417_v14  ;;  %1634 = vmatpush3.bf16.msra.mxu0 %v1633_v18 }
  0x15   : > { %496 = vperm.xlu0 %1659, %v1417_v14   ;;  %1635 = vmatprep.subr.bf16.mxu0 %v1700_v3 }
  0x16   : > { %585 = vperm.xlu1 %1660, %v582_v20  }
  0x18   : > { %1637 = vmatpush3.bf16.msra.mxu0 %v1636_v23  ;;  %v756_v23 = vrot.slane %v1876_v57, %v755_v17 }
  0x19   : > { %1638 = vmatprep.subr.bf16.mxu0 %v1700_v3 }
  0x1c   : > { %1640 = vmatpush3.bf16.msra.mxu0 %v1639_v24 }
  0x1d   : > { %1535 = vmatprep.subr.mxu0 %v1701_v7 }
  0x20   : > { %1536 = vmatpush3.msk.msra.mxu0 %vm508_vm2, %v489_v25 }
  0x21   : > { %1570 = vmatprep.subr.bf16.mxu0 %v1701_v7 }
  0x90   : > { %v473_v28 = vpop.permute.xlu0 %472 }
  0x91   : > { %vm474_vm4 = vcmp.eq.s32.totalorder %v473_v28, %v470_v27 }
  0x92   : > { %v1416_v29 = vsel %vm474_vm4, 1.0, %v1701_v7 }
  0x93   : > { %1538 = vmatmul.mubr.msk.f32.vlgmr.msra.gmra.mrb[0].mxu0 %vm504_vm3, %v1416_v29 }
  0x94   : > { %1572 = vmatprep.mubr.msk.bf16.mxu0 %vm1702_vm1, %v1701_v7  ;;  %v497_v36 = vpop.permute.xlu0 %496 }
  0x95   : > { %v586_v37 = vpop.permute.xlu1 %585  ;;  %v503_v38 = vmul.f32 %v502_v34, %v497_v36  ;;  %v468_v36 = vld [vmem:[%s461_s18] sm:$0x1] }
  0x96   : > { %v592_v39 = vmul.f32 %v591_v35, %v586_v37  ;;  %v858_v37 = vsub.f32 1.0, %v468_v36  ;;  %v1674_v36 = vld [vmem:[%s2038_s9 + $0x18] sm:$0xff]  }
 0x166   : > { %v578_v40 = vpop.f32.mrb[0].mxu0 }
 0x167   : > { %v579_v41 = vadd.f32 %v578_v40, %v503_v38  ;;  %v1539_v42 = vpop.f32.mrb[1].mxu0  ;;  %v859_v38 = vmul.f32 -1e+09, %v858_v37  ;;  %v1446_v37 = vld [vmem:[%s2037_s8] ss:$0 sm:$0xff] }
 0x169   : > { %v593_v44 = vadd.f32 %v592_v39, %v579_v41  ;;  %v864_v39 = vrot.slane %v859_v38, %v1850_v31 }
 0x16b   : > { %v595_v45 = vadd.f32 %v594_v43, %v593_v44 }
 0x16d   : > { %v599_v46 = vsel %vm598_vm5, %v595_v45, 0.0 }
 0x16e   : > { %600 = vadd.xlane.f32.xlu1 %v599_v46 }
 0x1fb   : > { %v601_v47 = vpop.xlane.xlu1 %600 }
 0x1fc   : > { %v603_v48 = vmul.f32 0.03125, %v601_v47 }
 0x1fe   : > { %v604_v49 = vsub.f32 %v595_v45, %v603_v48 }
 0x200   : > { %v605_v50 = vmul.f32 %v604_v49, %v604_v49 }
 0x202   : > { %v606_v51 = vsel %vm598_vm5, %v605_v50, 0.0 }
 0x203   : > { %607 = vadd.xlane.f32.xlu0 %v606_v51 }
 0x290   : > { %v608_v54 = vpop.xlane.xlu0 %607 }
 0x291   : > { %v609_v55 = vmul.f32 0.03125, %v608_v54 }
 0x293   : > { %v610_v56 = vadd.f32 1e-12, %v609_v55  ;;  %v1667_v55 = vld [vmem:[%s2035_s6 + $0x30] sm:$0xff]  }
 0x295   : > { %1677 = vrsqrt.f32 %v610_v56 }
 0x29f   : > { %v1678_v59 = vpop.eup %1677 }
 0x2a0   : > { %v612_v60 = vmul.f32 %v1678_v59, %v604_v49 }
 0x2a2   : > { %v617_v62 = vmul.f32 %v616_v58, %v612_v60  ;;  %v1668_v58 = vld [vmem:[%s2035_s6 + $0x38] sm:$0xff]  }
 0x2a4   : > { %v1882_v63 = vadd.f32 %v621_v61, %v617_v62 }
 0x2a6   : > { %v623_v1 = vpack.c.bf16 %v1882_v63, %v1882_v63 }
 0x2a8   : > { %1545 = vmatmul.mubr.msk.bf16.vlgmr.msra.gmra.mrb[0].mxu1 %vm598_vm5, %v623_v1 }
 0x2a9   : > { %1549 = vmatpush3.bf16.msra.mxu1 %v1663_v0  ;;  %1552 = vmatprep.mubr.msk.bf16.mxu1 %vm1702_vm1, %v1701_v7 }
 0x2aa   : > { %1550 = vmatprep.subr.bf16.mxu1 %v1701_v7 }
 0x2ad   : > { %1551 = vmatpush3.bf16.msra.mxu1 %v1664_v2 }
 0x2ae   : > { %1556 = vmatprep.subr.bf16.mxu1 %v1701_v7 }
 0x2b0   : > { %1553 = vmatmul.mubr.msk.bf16.vlgmr.msra.gmra.mrb[4].mxu1 %vm598_vm5, %v623_v1 }
 0x2b1   : > { %1557 = vmatpush3.bf16.msra.mxu1 %v1665_v4  ;;  %1560 = vmatprep.mubr.msk.bf16.mxu1 %vm1702_vm1, %v1701_v7 }
 0x2b2   : > { %1558 = vmatprep.subr.bf16.mxu1 %v1701_v7 }
 0x2b5   : > { %1559 = vmatpush3.bf16.msra.mxu1 %v1666_v5 }
 0x2b6   : > { %1564 = vmatprep.subr.bf16.mxu1 %v1701_v7 }
 0x2b8   : > { %1561 = vmatmul.mubr.msk.bf16.vlgmr.msra.gmra.mrb[8].mxu1 %vm598_vm5, %v623_v1  ;;  %v935_v1 = vsub.s32 5, %v1847_v30 }
 0x2b9   : > { %1566 = vmatprep.mubr.msk.bf16.mxu1 %vm1702_vm1, %v1701_v7 }
 0x2ba   : > { %v936_v2 = vrot.slane %v1876_v57, %v935_v1 }
 0x37b   : > { %v681_v6 = vpop.f32.mrb[0].mxu1 }
 0x37c   : > { %v1546_v8 = vpop.f32.mrb[1].mxu1  ;;  %v682_v24 = vadd.f32 %v681_v6, %v631_v19 }
 0x37d   : > { %v684_v10 = vpop.f32.mrb[2].mxu1 }
 0x37e   : > { %v1547_v11 = vpop.f32.mrb[3].mxu1  ;;  %v809_v29 = vpack.c.bf16 %v682_v24, %v682_v24 }
 0x383   : > { %v742_v14 = vpop.f32.mrb[4].mxu1 }
 0x384   : > { %v743_v15 = vadd.f32 %v742_v14, %v695_v12  ;;  %v1554_v16 = vpop.f32.mrb[5].mxu1 }
 0x385   : > { %v745_v18 = vpop.f32.mrb[6].mxu1 }
 0x386   : > { %v810_v20 = vpack.c.bf16 %v743_v15, %v743_v15  ;;  %v1555_v21 = vpop.f32.mrb[7].mxu1  ;;  %v1669_v18 = vld [vmem:[%s2036_s7] sm:$0xff]  }
 0x388   : > { %v815_v22 = vsel %vm598_vm5, %v810_v20, 0 }
 0x389   : > { %1565 = vmatpush3.bf16.xpose.msra.mxu1 %v815_v22  ;;  %v1008_v22 = vsub.s32 6, %v1847_v30 }
 0x38a   : > { %1584 = vmatprep.subr.bf16.mxu1 %v1701_v7 }
 0x38b   : > { %v803_v25 = vpop.f32.mrb[8].mxu1  ;;  %v1009_v24 = vrot.slane %v1876_v57, %v1008_v22 }
 0x38c   : > { %v804_v26 = vadd.f32 %v803_v25, %v756_v23  ;;  %v1562_v27 = vpop.f32.mrb[9].mxu1  ;;  %v1013_v23 = vsub.s32 7, %v1847_v30  ;;  %v1264_v30 = vld [vmem:[%s2040_s11 + $0x10] sm:$0xff] }
 0x38d   : > { %v806_v28 = vpop.f32.mrb[10].mxu1 }
 0x38e   : > { %v880_v33 = vpack.c.bf16 %v804_v26, %v804_v26  ;;  %v1563_v34 = vpop.f32.mrb[11].mxu1  ;;  %v1014_v27 = vrot.slane %v1876_v57, %v1013_v23  ;;  %v1673_v57 = vld [vmem:[%s2038_s9 + $0x10] sm:$0xff]  }
 0x38f   : > { %v1671_v34 = vld [vmem:[%s2038_s9] sm:$0xff]  }
 0x390   : > { %v885_v35 = vsel %vm508_vm2, %v880_v33, 0  ;;  %1567 = vmatmul.mubr.msk.bf16.vlgmr.msra.gmra.mrb[12].mxu1 %vm598_vm5, %v809_v29 }
 0x391   : > { %1571 = vmatpush3.bf16.msra.mxu0 %v885_v35  ;;  %1588 = vmatprep.mubr.msk.bf16.mxu1 %vm1702_vm1, %v1701_v7  ;;  %v1672_v35 = vld [vmem:[%s2038_s9 + $0x8] sm:$0xff]  }
 0x392   : > { %1576 = vmatprep.subr.bf16.mxu0 %v1701_v7  ;;  %1585 = vmatpush3.bf16.msra.mxu1 %v1669_v18 }
 0x393   : > { %1586 = vmatprep.subr.bf16.mxu1 %v1701_v7 }
 0x463   : > { %v851_v40 = vpop.f32.mrb[12].mxu1 }
 0x464   : > { %v857_v41 = vmul.f32 0.17677669, %v851_v40  ;;  %v1568_v42 = vpop.f32.mrb[13].mxu1 }
 0x465   : > { %v854_v43 = vpop.f32.mrb[14].mxu1 }
 0x466   : > { %v1569_v44 = vpop.f32.mrb[15].mxu1  ;;  %v866_v45 = vadd.f32 %v864_v39, %v857_v41 }
 0x468   : > { %v868_v46 = vsel %vm867_vm6, %v866_v45, -inf }
 0x469   : > { %869 = vmax.xlane.f32.xlu0 %v868_v46 }
 0x4f6   : > { %v870_v47 = vpop.xlane.xlu0 %869 }
 0x4f7   : > { %v871_v48 = vsub.f32 %v866_v45, %v870_v47 }
 0x4f9   : > { %v872_v49 = vmul.f32 1.442695, %v871_v48 }
 0x4fb   : > { %1679 = vpow2.f32 %v872_v49 }
 0x505   : > { %v1680_v50 = vpop.eup %1679 }
 0x506   : > { %v874_v51 = vsel %vm867_vm6, %v1680_v50, 0.0 }
 0x507   : > { %875 = vadd.xlane.f32.xlu1 %v874_v51 }
 0x594   : > { %v876_v52 = vpop.xlane.xlu1 %875 }
 0x595   : > { %1681 = vrcp.f32 %v876_v52 }
 0x59f   : > { %v1682_v53 = vpop.eup %1681 }
 0x5a0   : > { %v878_v54 = vmul.f32 %v1682_v53, %v1680_v50  ;;  %v597_v53 = vld [vmem:[%s2039_s10 + $0x8] sm:$0xf] }
 0x5a2   : > { %v879_v56 = vpack.c.bf16 %v878_v54, %v878_v54  ;;  %v1104_v54 = vrot.slane %v597_v53, %v1850_v31  ;;  %v1675_v31 = vld [vmem:[%s2035_s6 + $0x40] sm:$0xff]  }
 0x5a4   : > { %1573 = vmatmul.mubr.msk.bf16.vlgmr.msra.gmra.mrb[4].mxu0 %vm867_vm6, %v879_v56 }
 0x5a5   : > { %1577 = vmatpush3.bf16.msra.mxu0 %v1667_v55  ;;  %1580 = vmatprep.mubr.msk.bf16.mxu0 %vm1702_vm1, %v1701_v7 }
 0x5a6   : > { %1578 = vmatprep.subr.bf16.mxu0 %v1701_v7 }
 0x5a9   : > { %1579 = vmatpush3.bf16.msra.mxu0 %v1668_v58 }
 0x5aa   : > { %1592 = vmatprep.subr.bf16.mxu0 %v1701_v7 }
 0x677   : > { %v921_v59 = vpop.f32.mrb[4].mxu0 }
 0x678   : > { %v927_v60 = vpack.c.bf16 %v921_v59, %v921_v59  ;;  %v1574_v61 = vpop.f32.mrb[5].mxu0 }
 0x679   : > { %v924_v62 = vpop.f32.mrb[6].mxu0 }
 0x67a   : > { %v1575_v0 = vpop.f32.mrb[7].mxu0  ;;  %1581 = vmatmul.mubr.msk.bf16.vlgmr.msra.gmra.mrb[8].mxu0 %vm598_vm5, %v927_v60 }
 0x67b   : > { %1600 = vmatprep.mubr.msk.bf16.mxu0 %vm1702_vm1, %v1701_v7  ;;  %1593 = vmatpush3.bf16.msra.mxu0 %v1671_v34 }
 0x67c   : > { %1594 = vmatprep.subr.bf16.mxu0 %v1701_v7 }
 0x67f   : > { %1595 = vmatpush3.bf16.msra.mxu0 %v1672_v35 }
 0x680   : > { %1596 = vmatprep.subr.bf16.mxu0 %v1701_v7 }
 0x683   : > { %1597 = vmatpush3.bf16.msra.mxu0 %v1673_v57 }
 0x684   : > { %1598 = vmatprep.subr.bf16.mxu0 %v1701_v7 }
 0x687   : > { %1599 = vmatpush3.bf16.msra.mxu0 %v1674_v36 }
 0x74d   : > { %v986_v4 = vpop.f32.mrb[8].mxu0 }
 0x74e   : > { %v987_v5 = vadd.f32 %v986_v4, %v936_v2  ;;  %v1582_v6 = vpop.f32.mrb[9].mxu0 }
 0x74f   : > { %v989_v8 = vpop.f32.mrb[10].mxu0  ;;  %v1676_v6 = vld [vmem:[%s2035_s6 + $0x48] sm:$0xff]  }
 0x750   : > { %v1583_v9 = vpop.f32.mrb[11].mxu0  ;;  %v992_v10 = vadd.f32 %v987_v5, %v1882_v63  ;;  %v1670_v63 = vld [vmem:[%s2036_s7 + $0x8] sm:$0xff]  }
 0x751   : > { %1587 = vmatpush3.bf16.msra.mxu1 %v1670_v63  ;;  %v1262_v63 = vld [vmem:[%s2040_s11] sm:$0xff] }
 0x752   : > { %v993_v11 = vsel %vm598_vm5, %v992_v10, 0.0  ;;  %1604 = vmatprep.subr.bf16.mxu1 %v1701_v7 }
 0x753   : > { %994 = vadd.xlane.f32.xlu0 %v993_v11  ;;  %v1190_v11 = vrot.slane %v597_v53, %v1853_v32  ;;  %v1263_v32 = vld [vmem:[%s2040_s11 + $0x8] sm:$0xff] }
 0x7e0   : > { %v995_v12 = vpop.xlane.xlu0 %994 }
 0x7e1   : > { %v996_v14 = vmul.f32 0.03125, %v995_v12 }
 0x7e3   : > { %v997_v15 = vsub.f32 %v992_v10, %v996_v14  ;;  %v1195_v14 = vrot.slane %v597_v53, %v630_v13  ;;  %v1642_v13 = vpack.c.bf16 %v1263_v32, %v1262_v63 }
 0x7e5   : > { %v998_v16 = vmul.f32 %v997_v15, %v997_v15 }
 0x7e7   : > { %v999_v17 = vsel %vm598_vm5, %v998_v16, 0.0 }
 0x7e8   : > { %1000 = vadd.xlane.f32.xlu1 %v999_v17 }
 0x875   : > { %v1001_v19 = vpop.xlane.xlu1 %1000 }
 0x876   : > { %v1002_v20 = vmul.f32 0.03125, %v1001_v19  ;;  %v1265_v19 = vld [vmem:[%s2040_s11 + $0x18] sm:$0xff] }
 0x878   : > { %v1003_v21 = vadd.f32 1e-12, %v1002_v20  ;;  %v1216_v20 = vrot.slane %v597_v53, 3 }
 0x87a   : > { %1683 = vrsqrt.f32 %v1003_v21 }
 0x884   : > { %v1684_v25 = vpop.eup %1683 }
 0x885   : > { %v1005_v26 = vmul.f32 %v1684_v25, %v997_v15 }
 0x887   : > { %v1010_v28 = vmul.f32 %v1009_v24, %v1005_v26 }
 0x889   : > { %v1015_v29 = vadd.f32 %v1014_v27, %v1010_v28  ;;  %v1266_v27 = vld [vmem:[%s2041_s12] sm:$0x1] }
 0x88b   : > { %v1016_v33 = vpack.c.bf16 %v1015_v29, %v1015_v29 }
 0x88d   : > { %1589 = vmatmul.mubr.msk.bf16.vlgmr.msra.gmra.mrb[16].mxu1 %vm598_vm5, %v1016_v33 }
 0x88e   : > { %1608 = vmatprep.mubr.msk.bf16.mxu1 %vm1702_vm1, %v1701_v7  ;;  %1605 = vmatpush3.bf16.msra.mxu1 %v1675_v31 }
 0x88f   : > { %1606 = vmatprep.subr.bf16.mxu1 %v1701_v7 }
 0x892   : > { %1607 = vmatpush3.bf16.msra.mxu1 %v1676_v6 }
 0x893   : > { %1641 = vmatprep.subr.bf16.mxu1 %v1700_v3 }
 0x960   : > { %v1077_v38 = vpop.f32.mrb[16].mxu1 }
 0x961   : > { %v1078_v39 = vadd.f32 %v1446_v37, %v1077_v38  ;;  %v1590_v40 = vpop.f32.mrb[17].mxu1 }
 0x962   : > { %v1080_v41 = vpop.f32.mrb[18].mxu1 }
 0x963   : > { %v1083_v42 = vmul.f32 %v1078_v39, %v1078_v39  ;;  %v1591_v43 = vpop.f32.mrb[19].mxu1 }
 0x965   : > { %v1084_v44 = vmul.f32 %v1083_v42, %v1078_v39 }
 0x967   : > { %v1085_v45 = vmul.f32 0.044715, %v1084_v44 }
 0x969   : > { %v1086_v46 = vadd.f32 %v1085_v45, %v1078_v39 }
 0x96b   : > { %v1087_v47 = vmul.f32 0.7978846, %v1086_v46 }
 0x96d   : > { %1685 = vtanh.f32 %v1087_v47 }
 0x977   : > { %v1686_v48 = vpop.eup %1685 }
 0x978   : > { %v1089_v49 = vadd.f32 1.0, %v1686_v48 }
 0x97a   : > { %v1090_v50 = vmul.f32 0.5, %v1089_v49 }
 0x97c   : > { %v1091_v51 = vmul.f32 %v1090_v50, %v1078_v39 }
 0x97e   : > { %v1092_v52 = vpack.c.bf16 %v1091_v51, %v1091_v51 }
 0x980   : > { %1601 = vmatmul.mubr.msk.bf16.vlgmr.msra.gmra.mrb[12].mxu0 %vm1129_vm7, %v1092_v52 }
 0xa53   : > { %v1167_v55 = vpop.f32.mrb[12].mxu0 }
 0xa54   : > { %v1168_v56 = vadd.f32 %v1167_v55, %v1104_v54  ;;  %v1602_v58 = vpop.f32.mrb[13].mxu0 }
 0xa55   : > { %v1170_v59 = vpop.f32.mrb[14].mxu0 }
 0xa56   : > { %v1603_v60 = vpop.f32.mrb[15].mxu0  ;;  %v1173_v61 = vadd.f32 %v1168_v56, %v1015_v29 }
 0xa58   : > { %v1174_v62 = vsel %vm598_vm5, %v1173_v61, 0.0 }
 0xa59   : > { %1175 = vadd.xlane.f32.xlu0 %v1174_v62 }
 0xae6   : > { %v1176_v0 = vpop.xlane.xlu0 %1175 }
 0xae7   : > { %v1177_v1 = vmul.f32 0.03125, %v1176_v0 }
 0xae9   : > { %v1178_v2 = vsub.f32 %v1173_v61, %v1177_v1 }
 0xaeb   : > { %v1179_v4 = vmul.f32 %v1178_v2, %v1178_v2 }
 0xaed   : > { %v1180_v5 = vsel %vm598_vm5, %v1179_v4, 0.0 }
 0xaee   : > { %1181 = vadd.xlane.f32.xlu1 %v1180_v5 }
 0xb7b   : > { %v1182_v8 = vpop.xlane.xlu1 %1181 }
 0xb7c   : > { %v1183_v9 = vmul.f32 0.03125, %v1182_v8 }
 0xb7e   : > { %v1184_v10 = vadd.f32 1e-12, %v1183_v9 }
 0xb80   : > { %1687 = vrsqrt.f32 %v1184_v10 }
 0xb8a   : > { %v1688_v12 = vpop.eup %1687 }
 0xb8b   : > { %v1186_v15 = vmul.f32 %v1688_v12, %v1178_v2 }
 0xb8d   : > { %v1191_v16 = vmul.f32 %v1190_v11, %v1186_v15 }
 0xb8f   : > { %v1196_v17 = vadd.f32 %v1195_v14, %v1191_v16 }
 0xb91   : > { %v1197_v18 = vpack.c.bf16 %v1196_v17, %v1196_v17 }
 0xb93   : > { %1609 = vmatmul.mubr.msk.bf16.vlgmr.msra.gmra.mrb[20].mxu1 %vm598_vm5, %v1197_v18 }
 0xb94   : > { %1620 = vmatprep.mubr.msk.f32.mxu1 %vm1702_vm1, %v1701_v7  ;;  %1643 = vmatpush3.bf16.msra.mxu1 %v1642_v13  ;;  %v1645_v7 = vpack.c.bf16 %v1265_v19, %v1264_v30 }
 0xb95   : > { %1644 = vmatprep.subr.bf16.mxu1 %v1700_v3 }
 0xb98   : > { %1646 = vmatpush3.bf16.msra.mxu1 %v1645_v7 }
 0xc66   : > { %v1255_v21 = vpop.f32.mrb[20].mxu1 }
 0xc67   : > { %v1256_v22 = vadd.f32 %v1255_v21, %v1216_v20  ;;  %v1610_v23 = vpop.f32.mrb[21].mxu1 }
 0xc68   : > { %v1258_v24 = vpop.f32.mrb[22].mxu1 }
 0xc69   : > { %1689 = vtanh.f32 %v1256_v22  ;;  %v1611_v25 = vpop.f32.mrb[23].mxu1 }
 0xc73   : > { %v1690_v26 = vpop.eup %1689 }
 0xc74   : > { %1621 = vmatmul.mubr.msk.f32.vlgmr.msra.gmra.mrb[24].mxu1 %vm598_vm5, %v1690_v26 }
 0xd47   : > { %v1336_v3 = vpop.f32.mrb[24].mxu1 }
 0xd48   : > { %v1337_v28 = vadd.f32 %v1336_v3, %v1266_v27  ;;  %v1622_v29 = vpop.f32.mrb[25].mxu1 }
 0xd4a   : > { %1340 = vst [vmem:[%s464_s27] sm:$0x1] %v1337_v28 }
 0xd4b PF: > { %s23_s25 = sadd.s32 1, %s1697_s25  }
 0xd4c   : > { %p20_p4 = scmp.ge.s32.totalorder %s23_s25, 4  }
 0xd4e   :  { %22 = sbr.rel (!%p20_p4) target bundleno = 1 (0x1), region = 112 }

</bundles_post_ra>
